<compile_context>
chip_gen: v7x
topology: tpu7x:2x2x1
jax: 0.10.0
libtpu: 0.0.40
codegen_flags: <defaults>
</compile_context>

<pallas_src>
import jax
import jax.numpy as jnp
import numpy as np
from jax import lax
from jax.experimental import pallas as pl
from jax.experimental.pallas import tpu as pltpu


def _make_lstm_backward_kernel(T, D, unroll):
    """Build the fused backward-LSTM kernel for a (static) sequence length T."""

    def kernel(x_ref, h0_ref, c0_ref, wx_ref, wh_ref, b_ref,
               hseq_ref, cseq_ref, xw_sc):
        # ---- hoist all input-side work out of the recurrence ----------------
        # One (T, D) @ (D, 4D) MXU matmul gives the input contribution to the
        # gate pre-activations for all time steps; the bias is folded in here.
        xw_sc[...] = (jnp.dot(x_ref[...], wx_ref[...],
                              preferred_element_type=jnp.float32)
                      + b_ref[...])
        wh = wh_ref[...]                      # resident recurrent weights

        def step(i, carry):
            h, c = carry
            t = T - 1 - i                     # backward over time: T-1 .. 0
            post = (xw_sc[pl.ds(t, 1), :]
                    + jnp.dot(h, wh, preferred_element_type=jnp.float32))
            sig_all = jax.nn.sigmoid(post)            # i, f, o gates: 1 EUP pass
            gate_input = sig_all[:, 0 * D:1 * D]
            gate_forget = sig_all[:, 1 * D:2 * D]
            gate_output = sig_all[:, 2 * D:3 * D]
            gate_pre_c = jnp.tanh(post[:, 3 * D:4 * D])
            c_new = gate_forget * c + gate_input * gate_pre_c
            h_new = gate_output * jnp.tanh(c_new)
            hseq_ref[pl.ds(t, 1), :] = h_new
            cseq_ref[pl.ds(t, 1), :] = c_new
            return h_new, c_new

        carry0 = (h0_ref[...], c0_ref[...])
        if unroll:
            # Trace-time unroll: every time index becomes a static slice.
            carry = carry0
            for i in range(T):
                carry = step(i, carry)
        else:
            lax.fori_loop(0, T, step, carry0)

    return kernel


def encoder_rnn_backward_sequence(x_seq, h0, c0, W, b, *, unroll_max=64):
    """Run the backward encoder over a whole sequence in a single pallas_call.

    x_seq: (T, dim_model) already-embedded inputs, consumed t = T-1 .. 0.
    h0, c0: initial hidden/cell state (any shape squeezing to (dim_model,)).
    W: (2*dim_model, 4*dim_model);  b: (4*dim_model,)
    Returns (h_seq, c_seq), each (T, dim_model); h_seq[t]/c_seq[t] are the
    states after consuming x[T-1 .. t] (per-position backward states).
    """
    D = W.shape[0] // 2
    T = x_seq.shape[0]

    x_r = jnp.reshape(x_seq, (T, D)).astype(jnp.float32)
    h0_r = jnp.reshape(h0, (1, D)).astype(jnp.float32)
    c0_r = jnp.reshape(c0, (1, D)).astype(jnp.float32)
    Wx = W[:D, :].astype(jnp.float32)       # (D, 4D)  input -> gates
    Wh = W[D:, :].astype(jnp.float32)       # (D, 4D)  hidden -> gates
    b_r = jnp.reshape(b, (1, 4 * D)).astype(jnp.float32)

    kernel = _make_lstm_backward_kernel(T, D, unroll=(T <= unroll_max))
    vmem = pl.BlockSpec(memory_space=pltpu.MemorySpace.VMEM)

    h_seq, c_seq = pl.pallas_call(
        kernel,
        out_shape=(
            jax.ShapeDtypeStruct((T, D), jnp.float32),
            jax.ShapeDtypeStruct((T, D), jnp.float32),
        ),
        in_specs=[vmem] * 6,                 # everything resident in VMEM
        out_specs=(vmem, vmem),
        scratch_shapes=[pltpu.VMEM((T, 4 * D), jnp.float32)],  # x@Wx + b
    )(x_r, h0_r, c0_r, Wx, Wh, b_r)

    return h_seq, c_seq


def encoder_rnn_backward_step(xt, htm1, ctm1, W, b):
    """Exact EncoderRNN_Backward.forward semantics (one cell step), via the
    fused kernel with T=1.  Returns (ht, ct), each shaped (1, 1, dim_model)."""
    D = W.shape[0] // 2
    h_seq, c_seq = encoder_rnn_backward_sequence(
        jnp.reshape(xt, (1, D)), htm1, ctm1, W, b)
    return h_seq.reshape(1, 1, D), c_seq.reshape(1, 1, D)


def sample_weights(nrow, ncol, key):
    # Deterministic stand-in for the module's sample_weights (Glorot-uniform).
    bound = np.sqrt(6.0 / (nrow + ncol))
    return jax.random.uniform(key, (nrow, ncol), dtype=jnp.float32,
                              minval=-bound, maxval=bound)


def _ref_cell(xt, htm1, ctm1, W, b, D):
    # Pure-JAX replica of the PyTorch forward() math.
    inp = jnp.concatenate([xt.reshape(-1), htm1.reshape(-1)])
    post = b + inp @ W
    gi = jax.nn.sigmoid(post[:D])
    gf = jax.nn.sigmoid(post[D:2 * D])
    go = jax.nn.sigmoid(post[2 * D:3 * D])
    gc = jnp.tanh(post[3 * D:])
    ct = gf * ctm1.reshape(-1) + gi * gc
    ht = go * jnp.tanh(ct)
    return ht, ct


if __name__ == "__main__":
    dim_lang = 16     # embedding matrix exists on the module but is unused in forward()
    dim_model = 32
    seq_len = 8

    key = jax.random.PRNGKey(0)
    k_emb, k_w, k_b, k_x, k_h, k_c = jax.random.split(key, 6)

    # Parameters (b is a trainable Parameter; use nonzero values to exercise the add).
    Emb_enc_backward = sample_weights(dim_lang, dim_model, k_emb)   # unused in forward
    W_enc_backward = sample_weights(2 * dim_model, 4 * dim_model, k_w)
    b_enc_backward = 0.1 * jax.random.normal(k_b, (4 * dim_model,), dtype=jnp.float32)

    # Sequence of already-embedded tokens + initHidden-style zero state.
    x_seq = jax.random.normal(k_x, (seq_len, dim_model), dtype=jnp.float32)
    h0 = jnp.zeros((1, 1, dim_model), dtype=jnp.float32)
    c0 = jnp.zeros((1, 1, dim_model), dtype=jnp.float32)

    # --- fused whole-sequence backward pass (one pallas_call) ---
    h_seq, c_seq = encoder_rnn_backward_sequence(x_seq, h0, c0,
                                                 W_enc_backward, b_enc_backward)
    jax.block_until_ready((h_seq, c_seq))

    # Pure-JAX reference: step the cell backward over the sequence.
    ht_r = h0.reshape(-1)
    ct_r = c0.reshape(-1)
    h_ref = np.zeros((seq_len, dim_model), np.float32)
    c_ref = np.zeros((seq_len, dim_model), np.float32)
    for t in reversed(range(seq_len)):
        ht_r, ct_r = _ref_cell(x_seq[t], ht_r, ct_r,
                               W_enc_backward, b_enc_backward, dim_model)
        h_ref[t] = np.asarray(ht_r)
        c_ref[t] = np.asarray(ct_r)
    np.testing.assert_allclose(np.asarray(h_seq), h_ref, rtol=1e-4, atol=1e-4)
    np.testing.assert_allclose(np.asarray(c_seq), c_ref, rtol=1e-4, atol=1e-4)

    # --- single-step call matching the module's forward() exactly ---
    xt = jax.random.normal(k_x, (1, 1, dim_model), dtype=jnp.float32)
    htm1 = jax.random.normal(k_h, (1, 1, dim_model), dtype=jnp.float32)
    ctm1 = jax.random.normal(k_c, (1, 1, dim_model), dtype=jnp.float32)
    ht, ct = encoder_rnn_backward_step(xt, htm1, ctm1,
                                       W_enc_backward, b_enc_backward)
    jax.block_until_ready((ht, ct))
    ht_ref, ct_ref = _ref_cell(xt, htm1, ctm1.reshape(-1),
                               W_enc_backward, b_enc_backward, dim_model)
    np.testing.assert_allclose(np.asarray(ht).reshape(-1), np.asarray(ht_ref),
                               rtol=1e-4, atol=1e-4)
    np.testing.assert_allclose(np.asarray(ct).reshape(-1), np.asarray(ct_ref),
                               rtol=1e-4, atol=1e-4)

    print("KERNEL_OK")
</pallas_src>

<mosaic_0001>
module attributes {stable_mosaic.version = 11 : i64} {
  func.func @kernel(%arg0: memref<8x32xf32, #tpu.memory_space<vmem>>, %arg1: memref<1x32xf32, #tpu.memory_space<vmem>>, %arg2: memref<1x32xf32, #tpu.memory_space<vmem>>, %arg3: memref<32x128xf32, #tpu.memory_space<vmem>>, %arg4: memref<32x128xf32, #tpu.memory_space<vmem>>, %arg5: memref<1x128xf32, #tpu.memory_space<vmem>>, %arg6: memref<8x32xf32, #tpu.memory_space<vmem>>, %arg7: memref<8x32xf32, #tpu.memory_space<vmem>>, %arg8: memref<8x128xf32, #tpu.memory_space<vmem>>) attributes {dimension_semantics = [], scalar_prefetch = 0 : i64, scratch_operands = 1 : i64, tpu.core_type = #tpu.core_type<tc>} {
    %c0 = arith.constant 0 : index
    %c0_0 = arith.constant 0 : index
    %0 = vector.load %arg0[%c0, %c0_0] : memref<8x32xf32, #tpu.memory_space<vmem>>, vector<8x32xf32>
    %c0_1 = arith.constant 0 : index
    %c0_2 = arith.constant 0 : index
    %1 = vector.load %arg3[%c0_1, %c0_2] : memref<32x128xf32, #tpu.memory_space<vmem>>, vector<32x128xf32>
    %cst = arith.constant dense<0.000000e+00> : vector<8x128xf32>
    %2 = tpu.matmul %0, %1, %cst {dimension_numbers = #tpu.dot_dimension_numbers<[1], [0], [0], [1], [0, 0, 1, 1], [], []>} : vector<8x32xf32>, vector<32x128xf32>, vector<8x128xf32> -> vector<8x128xf32>
    %c0_3 = arith.constant 0 : index
    %c0_4 = arith.constant 0 : index
    %3 = vector.load %arg5[%c0_3, %c0_4] : memref<1x128xf32, #tpu.memory_space<vmem>>, vector<1x128xf32>
    %4 = vector.broadcast %3 : vector<1x128xf32> to vector<8x128xf32>
    %5 = arith.addf %2, %4 : vector<8x128xf32>
    %c0_5 = arith.constant 0 : index
    %c0_6 = arith.constant 0 : index
    %6 = vector.load %arg8[%c0_5, %c0_6] : memref<8x128xf32, #tpu.memory_space<vmem>>, vector<8x128xf32>
    tpu.vector_store %arg8[%c0_5, %c0_6], %5 {strides = array<i32>} : memref<8x128xf32, #tpu.memory_space<vmem>>, vector<8x128xf32>,
    %c0_7 = arith.constant 0 : index
    %c0_8 = arith.constant 0 : index
    %7 = vector.load %arg4[%c0_7, %c0_8] : memref<32x128xf32, #tpu.memory_space<vmem>>, vector<32x128xf32>
    %c0_9 = arith.constant 0 : index
    %c0_10 = arith.constant 0 : index
    %8 = vector.load %arg1[%c0_9, %c0_10] : memref<1x32xf32, #tpu.memory_space<vmem>>, vector<1x32xf32>
    %c0_11 = arith.constant 0 : index
    %c0_12 = arith.constant 0 : index
    %9 = vector.load %arg2[%c0_11, %c0_12] : memref<1x32xf32, #tpu.memory_space<vmem>>, vector<1x32xf32>
    %c7 = arith.constant 7 : index
    %c0_13 = arith.constant 0 : index
    %10 = vector.load %arg8[%c7, %c0_13] : memref<8x128xf32, #tpu.memory_space<vmem>>, vector<1x128xf32>
    %cst_14 = arith.constant dense<0.000000e+00> : vector<1x128xf32>
    %11 = tpu.matmul %8, %7, %cst_14 {dimension_numbers = #tpu.dot_dimension_numbers<[1], [0], [0], [1], [0, 0, 1, 1], [], []>} : vector<1x32xf32>, vector<32x128xf32>, vector<1x128xf32> -> vector<1x128xf32>
    %12 = arith.addf %10, %11 : vector<1x128xf32>
    %13 = arith.negf %12 : vector<1x128xf32>
    %14 = math.exp %13 : vector<1x128xf32>
    %cst_15 = arith.constant 1.000000e+00 : f32
    %15 = vector.broadcast %cst_15 : f32 to vector<1x128xf32>
    %16 = arith.addf %15, %14 : vector<1x128xf32>
    %17 = arith.divf %15, %16 : vector<1x128xf32>
    %18 = vector.extract_strided_slice %17 {offsets = [0, 0], sizes = [1, 32], strides = [1, 1]} : vector<1x128xf32> to vector<1x32xf32>
    %19 = vector.extract_strided_slice %17 {offsets = [0, 32], sizes = [1, 32], strides = [1, 1]} : vector<1x128xf32> to vector<1x32xf32>
    %20 = vector.extract_strided_slice %17 {offsets = [0, 64], sizes = [1, 32], strides = [1, 1]} : vector<1x128xf32> to vector<1x32xf32>
    %21 = vector.extract_strided_slice %12 {offsets = [0, 96], sizes = [1, 32], strides = [1, 1]} : vector<1x128xf32> to vector<1x32xf32>
    %22 = math.tanh %21 : vector<1x32xf32>
    %23 = arith.mulf %19, %9 : vector<1x32xf32>
    %24 = arith.mulf %18, %22 : vector<1x32xf32>
    %25 = arith.addf %23, %24 : vector<1x32xf32>
    %26 = math.tanh %25 : vector<1x32xf32>
    %27 = arith.mulf %20, %26 : vector<1x32xf32>
    %c7_16 = arith.constant 7 : index
    %c0_17 = arith.constant 0 : index
    %28 = vector.load %arg6[%c7_16, %c0_17] : memref<8x32xf32, #tpu.memory_space<vmem>>, vector<1x32xf32>
    tpu.vector_store %arg6[%c7_16, %c0_17], %27 {strides = array<i32>} : memref<8x32xf32, #tpu.memory_space<vmem>>, vector<1x32xf32>,
    %c7_18 = arith.constant 7 : index
    %c0_19 = arith.constant 0 : index
    %29 = vector.load %arg7[%c7_18, %c0_19] : memref<8x32xf32, #tpu.memory_space<vmem>>, vector<1x32xf32>
    tpu.vector_store %arg7[%c7_18, %c0_19], %25 {strides = array<i32>} : memref<8x32xf32, #tpu.memory_space<vmem>>, vector<1x32xf32>,
    %c6 = arith.constant 6 : index
    %c0_20 = arith.constant 0 : index
    %30 = vector.load %arg8[%c6, %c0_20] : memref<8x128xf32, #tpu.memory_space<vmem>>, vector<1x128xf32>
    %cst_21 = arith.constant dense<0.000000e+00> : vector<1x128xf32>
    %31 = tpu.matmul %27, %7, %cst_21 {dimension_numbers = #tpu.dot_dimension_numbers<[1], [0], [0], [1], [0, 0, 1, 1], [], []>} : vector<1x32xf32>, vector<32x128xf32>, vector<1x128xf32> -> vector<1x128xf32>
    %32 = arith.addf %30, %31 : vector<1x128xf32>
    %33 = arith.negf %32 : vector<1x128xf32>
    %34 = math.exp %33 : vector<1x128xf32>
    %cst_22 = arith.constant 1.000000e+00 : f32
    %35 = vector.broadcast %cst_22 : f32 to vector<1x128xf32>
    %36 = arith.addf %35, %34 : vector<1x128xf32>
    %37 = arith.divf %35, %36 : vector<1x128xf32>
    %38 = vector.extract_strided_slice %37 {offsets = [0, 0], sizes = [1, 32], strides = [1, 1]} : vector<1x128xf32> to vector<1x32xf32>
    %39 = vector.extract_strided_slice %37 {offsets = [0, 32], sizes = [1, 32], strides = [1, 1]} : vector<1x128xf32> to vector<1x32xf32>
    %40 = vector.extract_strided_slice %37 {offsets = [0, 64], sizes = [1, 32], strides = [1, 1]} : vector<1x128xf32> to vector<1x32xf32>
    %41 = vector.extract_strided_slice %32 {offsets = [0, 96], sizes = [1, 32], strides = [1, 1]} : vector<1x128xf32> to vector<1x32xf32>
    %42 = math.tanh %41 : vector<1x32xf32>
    %43 = arith.mulf %39, %25 : vector<1x32xf32>
    %44 = arith.mulf %38, %42 : vector<1x32xf32>
    %45 = arith.addf %43, %44 : vector<1x32xf32>
    %46 = math.tanh %45 : vector<1x32xf32>
    %47 = arith.mulf %40, %46 : vector<1x32xf32>
    %c6_23 = arith.constant 6 : index
    %c0_24 = arith.constant 0 : index
    %48 = vector.load %arg6[%c6_23, %c0_24] : memref<8x32xf32, #tpu.memory_space<vmem>>, vector<1x32xf32>
    tpu.vector_store %arg6[%c6_23, %c0_24], %47 {strides = array<i32>} : memref<8x32xf32, #tpu.memory_space<vmem>>, vector<1x32xf32>,
    %c6_25 = arith.constant 6 : index
    %c0_26 = arith.constant 0 : index
    %49 = vector.load %arg7[%c6_25, %c0_26] : memref<8x32xf32, #tpu.memory_space<vmem>>, vector<1x32xf32>
    tpu.vector_store %arg7[%c6_25, %c0_26], %45 {strides = array<i32>} : memref<8x32xf32, #tpu.memory_space<vmem>>, vector<1x32xf32>,
    %c5 = arith.constant 5 : index
    %c0_27 = arith.constant 0 : index
    %50 = vector.load %arg8[%c5, %c0_27] : memref<8x128xf32, #tpu.memory_space<vmem>>, vector<1x128xf32>
    %cst_28 = arith.constant dense<0.000000e+00> : vector<1x128xf32>
    %51 = tpu.matmul %47, %7, %cst_28 {dimension_numbers = #tpu.dot_dimension_numbers<[1], [0], [0], [1], [0, 0, 1, 1], [], []>} : vector<1x32xf32>, vector<32x128xf32>, vector<1x128xf32> -> vector<1x128xf32>
    %52 = arith.addf %50, %51 : vector<1x128xf32>
    %53 = arith.negf %52 : vector<1x128xf32>
    %54 = math.exp %53 : vector<1x128xf32>
    %cst_29 = arith.constant 1.000000e+00 : f32
    %55 = vector.broadcast %cst_29 : f32 to vector<1x128xf32>
    %56 = arith.addf %55, %54 : vector<1x128xf32>
    %57 = arith.divf %55, %56 : vector<1x128xf32>
    %58 = vector.extract_strided_slice %57 {offsets = [0, 0], sizes = [1, 32], strides = [1, 1]} : vector<1x128xf32> to vector<1x32xf32>
    %59 = vector.extract_strided_slice %57 {offsets = [0, 32], sizes = [1, 32], strides = [1, 1]} : vector<1x128xf32> to vector<1x32xf32>
    %60 = vector.extract_strided_slice %57 {offsets = [0, 64], sizes = [1, 32], strides = [1, 1]} : vector<1x128xf32> to vector<1x32xf32>
    %61 = vector.extract_strided_slice %52 {offsets = [0, 96], sizes = [1, 32], strides = [1, 1]} : vector<1x128xf32> to vector<1x32xf32>
    %62 = math.tanh %61 : vector<1x32xf32>
    %63 = arith.mulf %59, %45 : vector<1x32xf32>
    %64 = arith.mulf %58, %62 : vector<1x32xf32>
    %65 = arith.addf %63, %64 : vector<1x32xf32>
    %66 = math.tanh %65 : vector<1x32xf32>
    %67 = arith.mulf %60, %66 : vector<1x32xf32>
    %c5_30 = arith.constant 5 : index
    %c0_31 = arith.constant 0 : index
    %68 = vector.load %arg6[%c5_30, %c0_31] : memref<8x32xf32, #tpu.memory_space<vmem>>, vector<1x32xf32>
    tpu.vector_store %arg6[%c5_30, %c0_31], %67 {strides = array<i32>} : memref<8x32xf32, #tpu.memory_space<vmem>>, vector<1x32xf32>,
    %c5_32 = arith.constant 5 : index
    %c0_33 = arith.constant 0 : index
    %69 = vector.load %arg7[%c5_32, %c0_33] : memref<8x32xf32, #tpu.memory_space<vmem>>, vector<1x32xf32>
    tpu.vector_store %arg7[%c5_32, %c0_33], %65 {strides = array<i32>} : memref<8x32xf32, #tpu.memory_space<vmem>>, vector<1x32xf32>,
    %c4 = arith.constant 4 : index
    %c0_34 = arith.constant 0 : index
    %70 = vector.load %arg8[%c4, %c0_34] : memref<8x128xf32, #tpu.memory_space<vmem>>, vector<1x128xf32>
    %cst_35 = arith.constant dense<0.000000e+00> : vector<1x128xf32>
    %71 = tpu.matmul %67, %7, %cst_35 {dimension_numbers = #tpu.dot_dimension_numbers<[1], [0], [0], [1], [0, 0, 1, 1], [], []>} : vector<1x32xf32>, vector<32x128xf32>, vector<1x128xf32> -> vector<1x128xf32>
    %72 = arith.addf %70, %71 : vector<1x128xf32>
    %73 = arith.negf %72 : vector<1x128xf32>
    %74 = math.exp %73 : vector<1x128xf32>
    %cst_36 = arith.constant 1.000000e+00 : f32
    %75 = vector.broadcast %cst_36 : f32 to vector<1x128xf32>
    %76 = arith.addf %75, %74 : vector<1x128xf32>
    %77 = arith.divf %75, %76 : vector<1x128xf32>
    %78 = vector.extract_strided_slice %77 {offsets = [0, 0], sizes = [1, 32], strides = [1, 1]} : vector<1x128xf32> to vector<1x32xf32>
    %79 = vector.extract_strided_slice %77 {offsets = [0, 32], sizes = [1, 32], strides = [1, 1]} : vector<1x128xf32> to vector<1x32xf32>
    %80 = vector.extract_strided_slice %77 {offsets = [0, 64], sizes = [1, 32], strides = [1, 1]} : vector<1x128xf32> to vector<1x32xf32>
    %81 = vector.extract_strided_slice %72 {offsets = [0, 96], sizes = [1, 32], strides = [1, 1]} : vector<1x128xf32> to vector<1x32xf32>
    %82 = math.tanh %81 : vector<1x32xf32>
    %83 = arith.mulf %79, %65 : vector<1x32xf32>
    %84 = arith.mulf %78, %82 : vector<1x32xf32>
    %85 = arith.addf %83, %84 : vector<1x32xf32>
    %86 = math.tanh %85 : vector<1x32xf32>
    %87 = arith.mulf %80, %86 : vector<1x32xf32>
    %c4_37 = arith.constant 4 : index
    %c0_38 = arith.constant 0 : index
    %88 = vector.load %arg6[%c4_37, %c0_38] : memref<8x32xf32, #tpu.memory_space<vmem>>, vector<1x32xf32>
    tpu.vector_store %arg6[%c4_37, %c0_38], %87 {strides = array<i32>} : memref<8x32xf32, #tpu.memory_space<vmem>>, vector<1x32xf32>,
    %c4_39 = arith.constant 4 : index
    %c0_40 = arith.constant 0 : index
    %89 = vector.load %arg7[%c4_39, %c0_40] : memref<8x32xf32, #tpu.memory_space<vmem>>, vector<1x32xf32>
    tpu.vector_store %arg7[%c4_39, %c0_40], %85 {strides = array<i32>} : memref<8x32xf32, #tpu.memory_space<vmem>>, vector<1x32xf32>,
    %c3 = arith.constant 3 : index
    %c0_41 = arith.constant 0 : index
    %90 = vector.load %arg8[%c3, %c0_41] : memref<8x128xf32, #tpu.memory_space<vmem>>, vector<1x128xf32>
    %cst_42 = arith.constant dense<0.000000e+00> : vector<1x128xf32>
    %91 = tpu.matmul %87, %7, %cst_42 {dimension_numbers = #tpu.dot_dimension_numbers<[1], [0], [0], [1], [0, 0, 1, 1], [], []>} : vector<1x32xf32>, vector<32x128xf32>, vector<1x128xf32> -> vector<1x128xf32>
    %92 = arith.addf %90, %91 : vector<1x128xf32>
    %93 = arith.negf %92 : vector<1x128xf32>
    %94 = math.exp %93 : vector<1x128xf32>
    %cst_43 = arith.constant 1.000000e+00 : f32
    %95 = vector.broadcast %cst_43 : f32 to vector<1x128xf32>
    %96 = arith.addf %95, %94 : vector<1x128xf32>
    %97 = arith.divf %95, %96 : vector<1x128xf32>
    %98 = vector.extract_strided_slice %97 {offsets = [0, 0], sizes = [1, 32], strides = [1, 1]} : vector<1x128xf32> to vector<1x32xf32>
    %99 = vector.extract_strided_slice %97 {offsets = [0, 32], sizes = [1, 32], strides = [1, 1]} : vector<1x128xf32> to vector<1x32xf32>
    %100 = vector.extract_strided_slice %97 {offsets = [0, 64], sizes = [1, 32], strides = [1, 1]} : vector<1x128xf32> to vector<1x32xf32>
    %101 = vector.extract_strided_slice %92 {offsets = [0, 96], sizes = [1, 32], strides = [1, 1]} : vector<1x128xf32> to vector<1x32xf32>
    %102 = math.tanh %101 : vector<1x32xf32>
    %103 = arith.mulf %99, %85 : vector<1x32xf32>
    %104 = arith.mulf %98, %102 : vector<1x32xf32>
    %105 = arith.addf %103, %104 : vector<1x32xf32>
    %106 = math.tanh %105 : vector<1x32xf32>
    %107 = arith.mulf %100, %106 : vector<1x32xf32>
    %c3_44 = arith.constant 3 : index
    %c0_45 = arith.constant 0 : index
    %108 = vector.load %arg6[%c3_44, %c0_45] : memref<8x32xf32, #tpu.memory_space<vmem>>, vector<1x32xf32>
    tpu.vector_store %arg6[%c3_44, %c0_45], %107 {strides = array<i32>} : memref<8x32xf32, #tpu.memory_space<vmem>>, vector<1x32xf32>,
    %c3_46 = arith.constant 3 : index
    %c0_47 = arith.constant 0 : index
    %109 = vector.load %arg7[%c3_46, %c0_47] : memref<8x32xf32, #tpu.memory_space<vmem>>, vector<1x32xf32>
    tpu.vector_store %arg7[%c3_46, %c0_47], %105 {strides = array<i32>} : memref<8x32xf32, #tpu.memory_space<vmem>>, vector<1x32xf32>,
    %c2 = arith.constant 2 : index
    %c0_48 = arith.constant 0 : index
    %110 = vector.load %arg8[%c2, %c0_48] : memref<8x128xf32, #tpu.memory_space<vmem>>, vector<1x128xf32>
    %cst_49 = arith.constant dense<0.000000e+00> : vector<1x128xf32>
    %111 = tpu.matmul %107, %7, %cst_49 {dimension_numbers = #tpu.dot_dimension_numbers<[1], [0], [0], [1], [0, 0, 1, 1], [], []>} : vector<1x32xf32>, vector<32x128xf32>, vector<1x128xf32> -> vector<1x128xf32>
    %112 = arith.addf %110, %111 : vector<1x128xf32>
    %113 = arith.negf %112 : vector<1x128xf32>
    %114 = math.exp %113 : vector<1x128xf32>
    %cst_50 = arith.constant 1.000000e+00 : f32
    %115 = vector.broadcast %cst_50 : f32 to vector<1x128xf32>
    %116 = arith.addf %115, %114 : vector<1x128xf32>
    %117 = arith.divf %115, %116 : vector<1x128xf32>
    %118 = vector.extract_strided_slice %117 {offsets = [0, 0], sizes = [1, 32], strides = [1, 1]} : vector<1x128xf32> to vector<1x32xf32>
    %119 = vector.extract_strided_slice %117 {offsets = [0, 32], sizes = [1, 32], strides = [1, 1]} : vector<1x128xf32> to vector<1x32xf32>
    %120 = vector.extract_strided_slice %117 {offsets = [0, 64], sizes = [1, 32], strides = [1, 1]} : vector<1x128xf32> to vector<1x32xf32>
    %121 = vector.extract_strided_slice %112 {offsets = [0, 96], sizes = [1, 32], strides = [1, 1]} : vector<1x128xf32> to vector<1x32xf32>
    %122 = math.tanh %121 : vector<1x32xf32>
    %123 = arith.mulf %119, %105 : vector<1x32xf32>
    %124 = arith.mulf %118, %122 : vector<1x32xf32>
    %125 = arith.addf %123, %124 : vector<1x32xf32>
    %126 = math.tanh %125 : vector<1x32xf32>
    %127 = arith.mulf %120, %126 : vector<1x32xf32>
    %c2_51 = arith.constant 2 : index
    %c0_52 = arith.constant 0 : index
    %128 = vector.load %arg6[%c2_51, %c0_52] : memref<8x32xf32, #tpu.memory_space<vmem>>, vector<1x32xf32>
    tpu.vector_store %arg6[%c2_51, %c0_52], %127 {strides = array<i32>} : memref<8x32xf32, #tpu.memory_space<vmem>>, vector<1x32xf32>,
    %c2_53 = arith.constant 2 : index
    %c0_54 = arith.constant 0 : index
    %129 = vector.load %arg7[%c2_53, %c0_54] : memref<8x32xf32, #tpu.memory_space<vmem>>, vector<1x32xf32>
    tpu.vector_store %arg7[%c2_53, %c0_54], %125 {strides = array<i32>} : memref<8x32xf32, #tpu.memory_space<vmem>>, vector<1x32xf32>,
    %c1 = arith.constant 1 : index
    %c0_55 = arith.constant 0 : index
    %130 = vector.load %arg8[%c1, %c0_55] : memref<8x128xf32, #tpu.memory_space<vmem>>, vector<1x128xf32>
    %cst_56 = arith.constant dense<0.000000e+00> : vector<1x128xf32>
    %131 = tpu.matmul %127, %7, %cst_56 {dimension_numbers = #tpu.dot_dimension_numbers<[1], [0], [0], [1], [0, 0, 1, 1], [], []>} : vector<1x32xf32>, vector<32x128xf32>, vector<1x128xf32> -> vector<1x128xf32>
    %132 = arith.addf %130, %131 : vector<1x128xf32>
    %133 = arith.negf %132 : vector<1x128xf32>
    %134 = math.exp %133 : vector<1x128xf32>
    %cst_57 = arith.constant 1.000000e+00 : f32
    %135 = vector.broadcast %cst_57 : f32 to vector<1x128xf32>
    %136 = arith.addf %135, %134 : vector<1x128xf32>
    %137 = arith.divf %135, %136 : vector<1x128xf32>
    %138 = vector.extract_strided_slice %137 {offsets = [0, 0], sizes = [1, 32], strides = [1, 1]} : vector<1x128xf32> to vector<1x32xf32>
    %139 = vector.extract_strided_slice %137 {offsets = [0, 32], sizes = [1, 32], strides = [1, 1]} : vector<1x128xf32> to vector<1x32xf32>
    %140 = vector.extract_strided_slice %137 {offsets = [0, 64], sizes = [1, 32], strides = [1, 1]} : vector<1x128xf32> to vector<1x32xf32>
    %141 = vector.extract_strided_slice %132 {offsets = [0, 96], sizes = [1, 32], strides = [1, 1]} : vector<1x128xf32> to vector<1x32xf32>
    %142 = math.tanh %141 : vector<1x32xf32>
    %143 = arith.mulf %139, %125 : vector<1x32xf32>
    %144 = arith.mulf %138, %142 : vector<1x32xf32>
    %145 = arith.addf %143, %144 : vector<1x32xf32>
    %146 = math.tanh %145 : vector<1x32xf32>
    %147 = arith.mulf %140, %146 : vector<1x32xf32>
    %c1_58 = arith.constant 1 : index
    %c0_59 = arith.constant 0 : index
    %148 = vector.load %arg6[%c1_58, %c0_59] : memref<8x32xf32, #tpu.memory_space<vmem>>, vector<1x32xf32>
    tpu.vector_store %arg6[%c1_58, %c0_59], %147 {strides = array<i32>} : memref<8x32xf32, #tpu.memory_space<vmem>>, vector<1x32xf32>,
    %c1_60 = arith.constant 1 : index
    %c0_61 = arith.constant 0 : index
    %149 = vector.load %arg7[%c1_60, %c0_61] : memref<8x32xf32, #tpu.memory_space<vmem>>, vector<1x32xf32>
    tpu.vector_store %arg7[%c1_60, %c0_61], %145 {strides = array<i32>} : memref<8x32xf32, #tpu.memory_space<vmem>>, vector<1x32xf32>,
    %c0_62 = arith.constant 0 : index
    %c0_63 = arith.constant 0 : index
    %150 = vector.load %arg8[%c0_62, %c0_63] : memref<8x128xf32, #tpu.memory_space<vmem>>, vector<1x128xf32>
    %cst_64 = arith.constant dense<0.000000e+00> : vector<1x128xf32>
    %151 = tpu.matmul %147, %7, %cst_64 {dimension_numbers = #tpu.dot_dimension_numbers<[1], [0], [0], [1], [0, 0, 1, 1], [], []>} : vector<1x32xf32>, vector<32x128xf32>, vector<1x128xf32> -> vector<1x128xf32>
    %152 = arith.addf %150, %151 : vector<1x128xf32>
    %153 = arith.negf %152 : vector<1x128xf32>
    %154 = math.exp %153 : vector<1x128xf32>
    %cst_65 = arith.constant 1.000000e+00 : f32
    %155 = vector.broadcast %cst_65 : f32 to vector<1x128xf32>
    %156 = arith.addf %155, %154 : vector<1x128xf32>
    %157 = arith.divf %155, %156 : vector<1x128xf32>
    %158 = vector.extract_strided_slice %157 {offsets = [0, 0], sizes = [1, 32], strides = [1, 1]} : vector<1x128xf32> to vector<1x32xf32>
    %159 = vector.extract_strided_slice %157 {offsets = [0, 32], sizes = [1, 32], strides = [1, 1]} : vector<1x128xf32> to vector<1x32xf32>
    %160 = vector.extract_strided_slice %157 {offsets = [0, 64], sizes = [1, 32], strides = [1, 1]} : vector<1x128xf32> to vector<1x32xf32>
    %161 = vector.extract_strided_slice %152 {offsets = [0, 96], sizes = [1, 32], strides = [1, 1]} : vector<1x128xf32> to vector<1x32xf32>
    %162 = math.tanh %161 : vector<1x32xf32>
    %163 = arith.mulf %159, %145 : vector<1x32xf32>
    %164 = arith.mulf %158, %162 : vector<1x32xf32>
    %165 = arith.addf %163, %164 : vector<1x32xf32>
    %166 = math.tanh %165 : vector<1x32xf32>
    %167 = arith.mulf %160, %166 : vector<1x32xf32>
    %c0_66 = arith.constant 0 : index
    %c0_67 = arith.constant 0 : index
    %168 = vector.load %arg6[%c0_66, %c0_67] : memref<8x32xf32, #tpu.memory_space<vmem>>, vector<1x32xf32>
    tpu.vector_store %arg6[%c0_66, %c0_67], %167 {strides = array<i32>} : memref<8x32xf32, #tpu.memory_space<vmem>>, vector<1x32xf32>,
    %c0_68 = arith.constant 0 : index
    %c0_69 = arith.constant 0 : index
    %169 = vector.load %arg7[%c0_68, %c0_69] : memref<8x32xf32, #tpu.memory_space<vmem>>, vector<1x32xf32>
    tpu.vector_store %arg7[%c0_68, %c0_69], %165 {strides = array<i32>} : memref<8x32xf32, #tpu.memory_space<vmem>>, vector<1x32xf32>,
    return
  }
}

</mosaic_0001>

<bundles_post_ra>
// kernel: tpu_custom_call.1
= control target key start
LH: loop header
LB: loop body
LE: loop exit
PB: predicated region body
PF: predicated region fallthrough
CT: control target
= control target key end

     0   :  { %13 = vsyncpa [#allocation4], 0  ;;  %s1747_s0 = inlined_call_operand.hbm [shape: f32[8,32], index: 0, kind: input, shape index: {}]   ;;  %s1748_s1 = inlined_call_operand.vmem [shape: f32[1,32], index: 1, kind: input, shape index: {}]   ;;  %s1749_s2 = inlined_call_operand.vmem [shape: f32[1,32], index: 2, kind: input, shape index: {}]   ;;  %s1750_s3 = inlined_call_operand.hbm [shape: f32[32,128], index: 3, kind: input, shape index: {}]   ;;  %s1751_s4 = inlined_call_operand.hbm [shape: f32[32,128], index: 4, kind: input, shape index: {}]   ;;  %s1752_s5 = inlined_call_operand.vmem [shape: f32[1,128], index: 5, kind: input, shape index: {}]   ;;  %s1753_s6 = inlined_call_operand.hbm [shape: f32[8,32], index: 6, kind: output, shape index: {0}]   ;;  %s1754_s7 = inlined_call_operand.hbm [shape: f32[8,32], index: 7, kind: output, shape index: {1}]  }
   0x1   :  { %14 = vsyncpa [#allocation7], 0 }
   0x2   :  { %15 = vsyncpa [#allocation5], 0 }
   0x3   :  { %16 = vsyncpa [#allocation11], 0  ;;  %s1475_s24 = smov [#allocation6]   ;;  %s1357_s28 = scalar_lea.hbm %s1750_s3, 512 }
   0x4   :  { %s36_s25 = sshll.u32 %s1475_s24, 4  ;;  %p1358_p0 = scmp.ne.s32.totalorder %s1750_s3, %s1357_s28  ;;  %s37_s25 = int_to_ptr.vmem [resolvable:$true] %s36_s25 }
   0x5   :  { %p1361_p1 = scmp.lt.u32.totalorder %s1357_s28, %s1750_s3 }
   0x7   :  { %p1363_p2 = pnand %p1361_p1, %p1358_p0 }
   0x9   :  { %1366 = shalt.err (!%p1363_p2)
}
   0xa   :  { %s1367_s10 = scalar_lea.vmem %s37_s25, 512  ;;  %p1372_p4 = scmp.lt.s32.totalorder %s37_s25, %s37_s25 }
   0xb   :  { %p1368_p3 = scmp.ne.s32.totalorder %s37_s25, %s1367_s10  ;;  %p1373_p5 = scmp.lt.s32.totalorder %s1367_s10, %s1367_s10 }
   0xd   :  { %p1374_p6 = por %p1373_p5, %p1372_p4 }
   0xf   :  { %p1375_p7 = pnand %p1374_p6, %p1368_p3 }
  0x11   :  { %1378 = shalt.err (!%p1375_p7)
}
  0x12   :  { %s1476_s11 = smov 128   ;;  %s1477_s12 = smov 8  }
  0x13   :  { %42 = dma.hbm_to_vmem [thread:$0]  %s1750_s3, 512, %s37_s25, [#allocation7], %s1476_s11, %s1476_s11, %s1477_s12  }
  0x14   :  { %s1478_s15 = smov [#allocation3]   ;;  %s1479_s17 = smov [#allocation8]  }
  0x15   :  { %s23_s16 = sshll.u32 %s1478_s15, 4  ;;  %s48_s18 = sshll.u32 %s1479_s17, 4  ;;  %s24_s16 = int_to_ptr.vmem [resolvable:$true] %s23_s16  ;;  %s49_s18 = int_to_ptr.vmem [resolvable:$true] %s48_s18 }
  0x16   :  { %s1379_s21 = scalar_lea.hbm %s1747_s0, 128 }
  0x17   :  { %p1380_p8 = scmp.ne.s32.totalorder %s1747_s0, %s1379_s21  ;;  %p1383_p9 = scmp.lt.u32.totalorder %s1379_s21, %s1747_s0 }
  0x19   :  { %p1385_p10 = pnand %p1383_p9, %p1380_p8 }
  0x1b   :  { %1388 = shalt.err (!%p1385_p10)
}
  0x1c   :  { %s1389_s3 = scalar_lea.vmem %s24_s16, 128  ;;  %p1394_p12 = scmp.lt.s32.totalorder %s24_s16, %s24_s16 }
  0x1d   :  { %p1390_p11 = scmp.ne.s32.totalorder %s24_s16, %s1389_s3  ;;  %p1395_p13 = scmp.lt.s32.totalorder %s1389_s3, %s1389_s3 }
  0x1f   :  { %p1396_p0 = por %p1395_p13, %p1394_p12 }
  0x21   :  { %p1397_p1 = pnand %p1396_p0, %p1390_p11 }
  0x23   :  { %1400 = shalt.err (!%p1397_p1)
}
  0x24   :  { %26 = dma.hbm_to_vmem [thread:$0]  %s1747_s0, 128, %s24_s16, [#allocation4]  }
  0x25   :  { %s1401_s30 = scalar_lea.hbm %s1751_s4, 512 }
  0x26   :  { %p1402_p2 = scmp.ne.s32.totalorder %s1751_s4, %s1401_s30  ;;  %p1405_p3 = scmp.lt.u32.totalorder %s1401_s30, %s1751_s4 }
  0x28   :  { %p1407_p4 = pnand %p1405_p3, %p1402_p2 }
  0x2a   :  { %1410 = shalt.err (!%p1407_p4)
}
  0x2b   :  { %s1411_s14 = scalar_lea.vmem %s49_s18, 512  ;;  %p1416_p6 = scmp.lt.s32.totalorder %s49_s18, %s49_s18 }
  0x2c   :  { %p1412_p5 = scmp.ne.s32.totalorder %s49_s18, %s1411_s14  ;;  %p1417_p7 = scmp.lt.s32.totalorder %s1411_s14, %s1411_s14 }
  0x2e   :  { %p1418_p8 = por %p1417_p7, %p1416_p6 }
  0x30   :  { %p1419_p9 = pnand %p1418_p8, %p1412_p5 }
  0x32   :  { %1422 = shalt.err (!%p1419_p9)
}
  0x33   :  { %54 = dma.hbm_to_vmem [thread:$0]  %s1751_s4, 512, %s49_s18, [#allocation7], %s1476_s11, %s1476_s11, %s1477_s12  }
  0x34   :  { %1467 = dma.done.wait [#allocation4], 128  }
  0x35   :  { %1468 = vsyncadd [#allocation4], 4294967168 }
  0x36   :  { %1469 = dma.done.wait [#allocation7], 1024  }
  0x37   :  { %1470 = vsyncadd [#allocation7], 4294966272  ;;  %v1480_v0 = vmov 0.0|0.0   ;;  %vm1481_vm0 = vmmov 0   ;;  %v1482_v1 = vmov 0.0   ;;  %v67_v2 = vld [vmem:[#allocation6] sm:$0xff] }
  0x38   :  { %1226 = vmatprep.subr.bf16.mxu0 %v1480_v0  ;;  %1135 = vmatprep.mubr.msk.f32.mxu0 %vm1481_vm0, %v1482_v1  ;;  %v68_v3 = vld [vmem:[#allocation6 + $0x8] sm:$0xff]  ;;  %v69_v4 = vld [vmem:[#allocation6 + $0x10] sm:$0xff]  ;;  %v70_v6 = vld [vmem:[#allocation6 + $0x18] sm:$0xff]  ;;  %vm78_vm1 = vcmask 261120   ;;  %s1483_s16 = smov 32   ;;  %vm270_vm2 = vcmask 253952  }
  0x39   :  { %1232 = vmatprep.subr.bf16.mxu1 %v1480_v0  ;;  %1146 = vmatprep.mubr.msk.f32.mxu1 %vm1481_vm0, %v1482_v1  ;;  %v1227_v5 = vpack.c.bf16 %v68_v3, %v67_v2  ;;  %v153_v7 = vld [vmem:[#allocation8] sm:$0xff]  ;;  %v154_v8 = vld [vmem:[#allocation8 + $0x8] sm:$0xff]  ;;  %v155_v9 = vld [vmem:[#allocation8 + $0x10] sm:$0xff]  ;;  %v1230_v11 = vpack.c.bf16 %v70_v6, %v69_v4  ;;  %s1486_s19 = smov [#allocation10]  }
  0x3a   :  { %v156_v10 = vld [vmem:[#allocation8 + $0x18] sm:$0xff]  ;;  %v1576_v12 = vpack.c.bf16 %v154_v8, %v153_v7  ;;  %v157_v15 = vld [vmem:[%s1748_s1] sm:$0x1]  ;;  %s1049_s20 = sshll.u32 %s1486_s19, 4  ;;  %s1050_s20 = int_to_ptr.vmem [resolvable:$true] %s1049_s20 }
  0x3b   :  { %1228 = vmatpush3.bf16.msra.mxu0 %v1227_v5  ;;  %v1580_v13 = vpack.c.bf16 %v156_v10, %v155_v9  ;;  %v66_v14 = vld [vmem:[#allocation3] sm:$0xff]  ;;  %v1063_v16 = vld [vmem:[%s1752_s5] ss:$0 sm:$0xff]  ;;  %s1485_s5 = smov 96   ;;  %s1423_s21 = scalar_lea.vmem %s1050_s20, 128 }
  0x3c   :  { %1229 = vmatprep.subr.bf16.mxu0 %v1480_v0  ;;  %1234 = vmatpush3.bf16.msra.mxu1 %v1576_v12  ;;  %v1067_v25 = vld [vmem:[%s1749_s2] ss:$0 sm:$0xff]  ;;  %s1484_s2 = smov 64   ;;  %p1424_p10 = scmp.ne.s32.totalorder %s1050_s20, %s1423_s21 }
  0x3d   :  { %1235 = vmatprep.subr.bf16.mxu1 %v1480_v0  ;;  %p1428_p11 = scmp.lt.s32.totalorder %s1050_s20, %s1050_s20  ;;  %p1429_p12 = scmp.lt.s32.totalorder %s1423_s21, %s1423_s21 }
  0x3f   :  { %1231 = vmatpush3.bf16.msra.mxu0 %v1230_v11  ;;  %p1430_p13 = por %p1429_p12, %p1428_p11 }
  0x40   :  { %1238 = vmatprep.subr.bf16.mxu0 %v1480_v0  ;;  %1237 = vmatpush3.bf16.msra.mxu1 %v1580_v13 }
  0x41   :  { %1244 = vmatprep.subr.bf16.mxu1 %v1480_v0  ;;  %p1431_p0 = pnand %p1430_p13, %p1424_p10 }
  0x42   :  { %1136 = vmatmul.mubr.msk.f32.vlgmr.msra.gmra.mrb[0].mxu0 %vm78_vm1, %v66_v14 }
  0x43   :  { %1240 = vmatpush3.bf16.msra.mxu0 %v1576_v12  ;;  %1157 = vmatprep.mubr.msk.f32.mxu0 %vm1481_vm0, %v1482_v1 }
  0x44   :  { %1147 = vmatmul.mubr.msk.f32.vlgmr.msra.gmra.mrb[0].mxu1 %vm78_vm1, %v157_v15  ;;  %1241 = vmatprep.subr.bf16.mxu0 %v1480_v0 }
  0x45   :  { %1246 = vmatpush3.bf16.msra.mxu1 %v1576_v12  ;;  %1168 = vmatprep.mubr.msk.f32.mxu1 %vm1481_vm0, %v1482_v1 }
  0x46   :  { %1247 = vmatprep.subr.bf16.mxu1 %v1480_v0 }
  0x47   :  { %1243 = vmatpush3.bf16.msra.mxu0 %v1580_v13 }
  0x48   :  { %1250 = vmatprep.subr.bf16.mxu0 %v1480_v0 }
  0x49   :  { %1249 = vmatpush3.bf16.msra.mxu1 %v1580_v13 }
  0x4a   :  { %1256 = vmatprep.subr.bf16.mxu1 %v1480_v0 }
 0x115   :  { %v148_v17 = vpop.f32.mrb[0].mxu0 }
 0x116   :  { %v149_v18 = vadd.f32 %v1063_v16, %v148_v17  ;;  %v1137_v19 = vpop.f32.mrb[1].mxu0 }
 0x117   :  { %v229_v20 = vpop.f32.mrb[0].mxu1 }
 0x118   :  { %152 = vst [vmem:[#allocation2] sm:$0xff] %v149_v18  ;;  %v1148_v21 = vpop.f32.mrb[1].mxu1 }
 0x11f   :  { %v159_v22 = vld [vmem:[#allocation2 + $0x7] sm:$0x1]  ;;  %v277_v40 = vld [vmem:[#allocation2 + $0x6] sm:$0x1]  ;;  %v385_v58 = vld [vmem:[#allocation2 + $0x5] sm:$0x1] }
 0x120   :  { %v233_v23 = vadd.f32 %v229_v20, %v159_v22  ;;  %v493_v16 = vld [vmem:[#allocation2 + $0x4] sm:$0x1] }
 0x122   :  { %1293 = vtanh.f32 %v233_v23  ;;  %v1066_v26 = vmul.f32 -1.442695, %v233_v23 }
 0x124   :  { %1295 = vpow2.f32 %v1066_v26 }
 0x12c   :  { %v1294_v24 = vpop.eup %1293 }
 0x12d   :  { %251 = vrot.lane.b32.xlu0 %v1294_v24, %s1483_s16 }
 0x12e   :  { %v1296_v27 = vpop.eup %1295 }
 0x12f   :  { %v237_v28 = vadd.f32 1.0, %v1296_v27 }
 0x131   :  { %246 = vrot.lane.b32.xlu0 %v1067_v25, %s1483_s16  ;;  %1297 = vrcp.f32 %v237_v28 }
 0x13b   :  { %v1298_v29 = vpop.eup %1297 }
 0x19f   :  { %v252_v30 = vpop.permute.xlu0 %251 }
 0x1a0   :  { %v254_v31 = vmul.f32 %v1298_v29, %v252_v30 }
 0x1a2   :  { %256 = vrot.lane.b32.xlu1 %v254_v31, %s1483_s16 }
 0x1a3   :  { %v247_v32 = vpop.permute.xlu0 %246 }
 0x1a4   :  { %v249_v33 = vmul.f32 %v1298_v29, %v247_v32 }
 0x214   :  { %v257_v34 = vpop.permute.xlu1 %256 }
 0x215   :  { %v1612_v35 = vadd.f32 %v257_v34, %v249_v33  ;;  %v601_v34 = vld [vmem:[#allocation2 + $0x3] sm:$0x1] }
 0x217   :  { %1299 = vtanh.f32 %v1612_v35 }
 0x221   :  { %v1300_v36 = vpop.eup %1299 }
 0x222   :  { %262 = vrot.lane.b32.xlu1 %v1300_v36, %s1483_s16 }
 0x294   :  { %v263_v37 = vpop.permute.xlu1 %262 }
 0x295   :  { %v265_v38 = vmul.f32 %v1298_v29, %v263_v37 }
 0x297   :  { %267 = vrot.lane.b32.xlu0 %v265_v38, %s1484_s2 }
 0x309   :  { %v268_v39 = vpop.permute.xlu0 %267 }
 0x30a   :  { %271 = vst.msk [vmem:[#allocation9 + $0x7] sm:$0x1] %vm270_vm2, %v268_v39  ;;  %1158 = vmatmul.mubr.msk.f32.vlgmr.msra.gmra.mrb[2].mxu0 %vm78_vm1, %v268_v39 }
 0x30b   :  { %1252 = vmatpush3.bf16.msra.mxu0 %v1576_v12  ;;  %1179 = vmatprep.mubr.msk.f32.mxu0 %vm1481_vm0, %v1482_v1 }
 0x30c   :  { %1253 = vmatprep.subr.bf16.mxu0 %v1480_v0 }
 0x30f   :  { %1255 = vmatpush3.bf16.msra.mxu0 %v1580_v13 }
 0x310   :  { %1262 = vmatprep.subr.bf16.mxu0 %v1480_v0 }
 0x3dd   :  { %v346_v41 = vpop.f32.mrb[2].mxu0 }
 0x3de   :  { %v350_v42 = vadd.f32 %v346_v41, %v277_v40  ;;  %v1159_v43 = vpop.f32.mrb[3].mxu0 }
 0x3e0   :  { %1301 = vtanh.f32 %v350_v42  ;;  %v1069_v45 = vmul.f32 -1.442695, %v350_v42 }
 0x3e2   :  { %1303 = vpow2.f32 %v1069_v45 }
 0x3ea   :  { %v1302_v44 = vpop.eup %1301 }
 0x3eb   :  { %360 = vrot.lane.b32.xlu1 %v1302_v44, %s1483_s16 }
 0x3ec   :  { %v1304_v46 = vpop.eup %1303 }
 0x3ed   :  { %v354_v47 = vadd.f32 1.0, %v1304_v46 }
 0x3ef   :  { %1305 = vrcp.f32 %v354_v47 }
 0x3f9   :  { %v1306_v48 = vpop.eup %1305 }
 0x3fa   :  { %v358_v51 = vmul.f32 %v1306_v48, %v1612_v35 }
 0x45d   :  { %v361_v49 = vpop.permute.xlu1 %360 }
 0x45e   :  { %v363_v50 = vmul.f32 %v1306_v48, %v361_v49 }
 0x460   :  { %365 = vrot.lane.b32.xlu0 %v363_v50, %s1483_s16 }
 0x4d2   :  { %v366_v52 = vpop.permute.xlu0 %365 }
 0x4d3   :  { %v1628_v53 = vadd.f32 %v366_v52, %v358_v51 }
 0x4d5   :  { %1307 = vtanh.f32 %v1628_v53 }
 0x4df   :  { %v1308_v54 = vpop.eup %1307 }
 0x4e0   :  { %371 = vrot.lane.b32.xlu1 %v1308_v54, %s1483_s16  ;;  %v709_v54 = vld [vmem:[#allocation2 + $0x2] sm:$0x1] }
 0x552   :  { %v372_v55 = vpop.permute.xlu1 %371 }
 0x553   :  { %v374_v56 = vmul.f32 %v1306_v48, %v372_v55 }
 0x555   :  { %376 = vrot.lane.b32.xlu0 %v374_v56, %s1484_s2 }
 0x5c7   :  { %v377_v57 = vpop.permute.xlu0 %376 }
 0x5c8   :  { %379 = vst.msk [vmem:[#allocation9 + $0x6] sm:$0x1] %vm270_vm2, %v377_v57  ;;  %1169 = vmatmul.mubr.msk.f32.vlgmr.msra.gmra.mrb[2].mxu1 %vm78_vm1, %v377_v57 }
 0x5c9   :  { %1258 = vmatpush3.bf16.msra.mxu1 %v1576_v12  ;;  %1190 = vmatprep.mubr.msk.f32.mxu1 %vm1481_vm0, %v1482_v1 }
 0x5ca   :  { %1259 = vmatprep.subr.bf16.mxu1 %v1480_v0 }
 0x5cd   :  { %1261 = vmatpush3.bf16.msra.mxu1 %v1580_v13 }
 0x5ce   :  { %1268 = vmatprep.subr.bf16.mxu1 %v1480_v0 }
 0x69b   :  { %v454_v59 = vpop.f32.mrb[2].mxu1 }
 0x69c   :  { %v458_v60 = vadd.f32 %v454_v59, %v385_v58  ;;  %v1170_v61 = vpop.f32.mrb[3].mxu1 }
 0x69e   :  { %1309 = vtanh.f32 %v458_v60  ;;  %v1071_v63 = vmul.f32 -1.442695, %v458_v60 }
 0x6a0   :  { %1311 = vpow2.f32 %v1071_v63 }
 0x6a8   :  { %v1310_v62 = vpop.eup %1309 }
 0x6a9   :  { %468 = vrot.lane.b32.xlu1 %v1310_v62, %s1483_s16 }
 0x6aa   :  { %v1312_v2 = vpop.eup %1311 }
 0x6ab   :  { %v462_v3 = vadd.f32 1.0, %v1312_v2 }
 0x6ad   :  { %1313 = vrcp.f32 %v462_v3 }
 0x6b7   :  { %v1314_v4 = vpop.eup %1313 }
 0x6b8   :  { %v466_v7 = vmul.f32 %v1314_v4, %v1628_v53 }
 0x71b   :  { %v469_v5 = vpop.permute.xlu1 %468 }
 0x71c   :  { %v471_v6 = vmul.f32 %v1314_v4, %v469_v5 }
 0x71e   :  { %473 = vrot.lane.b32.xlu0 %v471_v6, %s1483_s16  ;;  %v817_v6 = vld [vmem:[#allocation2 + $0x1] sm:$0x1] }
 0x790   :  { %v474_v8 = vpop.permute.xlu0 %473 }
 0x791   :  { %v1644_v9 = vadd.f32 %v474_v8, %v466_v7 }
 0x793   :  { %1315 = vtanh.f32 %v1644_v9 }
 0x79d   :  { %v1316_v10 = vpop.eup %1315 }
 0x79e   :  { %479 = vrot.lane.b32.xlu1 %v1316_v10, %s1483_s16 }
 0x810   :  { %v480_v11 = vpop.permute.xlu1 %479 }
 0x811   :  { %v482_v14 = vmul.f32 %v1314_v4, %v480_v11 }
 0x813   :  { %484 = vrot.lane.b32.xlu0 %v482_v14, %s1484_s2 }
 0x885   :  { %v485_v15 = vpop.permute.xlu0 %484 }
 0x886   :  { %487 = vst.msk [vmem:[#allocation9 + $0x5] sm:$0x1] %vm270_vm2, %v485_v15  ;;  %1180 = vmatmul.mubr.msk.f32.vlgmr.msra.gmra.mrb[4].mxu0 %vm78_vm1, %v485_v15 }
 0x887   :  { %1264 = vmatpush3.bf16.msra.mxu0 %v1576_v12  ;;  %1201 = vmatprep.mubr.msk.f32.mxu0 %vm1481_vm0, %v1482_v1 }
 0x888   :  { %1265 = vmatprep.subr.bf16.mxu0 %v1480_v0 }
 0x88b   :  { %1267 = vmatpush3.bf16.msra.mxu0 %v1580_v13 }
 0x88c   :  { %1274 = vmatprep.subr.bf16.mxu0 %v1480_v0 }
 0x959   :  { %v562_v17 = vpop.f32.mrb[4].mxu0 }
 0x95a   :  { %v566_v18 = vadd.f32 %v562_v17, %v493_v16  ;;  %v1181_v19 = vpop.f32.mrb[5].mxu0 }
 0x95c   :  { %1317 = vtanh.f32 %v566_v18  ;;  %v1073_v21 = vmul.f32 -1.442695, %v566_v18 }
 0x95e   :  { %1319 = vpow2.f32 %v1073_v21 }
 0x966   :  { %v1318_v20 = vpop.eup %1317 }
 0x967   :  { %576 = vrot.lane.b32.xlu1 %v1318_v20, %s1483_s16 }
 0x968   :  { %v1320_v22 = vpop.eup %1319 }
 0x969   :  { %v570_v23 = vadd.f32 1.0, %v1320_v22 }
 0x96b   :  { %1321 = vrcp.f32 %v570_v23 }
 0x975   :  { %v1322_v24 = vpop.eup %1321 }
 0x976   :  { %v574_v27 = vmul.f32 %v1322_v24, %v1644_v9 }
 0x9d9   :  { %v577_v25 = vpop.permute.xlu1 %576 }
 0x9da   :  { %v579_v26 = vmul.f32 %v1322_v24, %v577_v25 }
 0x9dc   :  { %581 = vrot.lane.b32.xlu0 %v579_v26, %s1483_s16 }
 0xa4e   :  { %v582_v28 = vpop.permute.xlu0 %581 }
 0xa4f   :  { %v1660_v29 = vadd.f32 %v582_v28, %v574_v27  ;;  %v925_v27 = vld [vmem:[#allocation2] sm:$0x1] }
 0xa51   :  { %1323 = vtanh.f32 %v1660_v29 }
 0xa5b   :  { %v1324_v30 = vpop.eup %1323 }
 0xa5c   :  { %587 = vrot.lane.b32.xlu1 %v1324_v30, %s1483_s16 }
 0xace   :  { %v588_v31 = vpop.permute.xlu1 %587 }
 0xacf   :  { %v590_v32 = vmul.f32 %v1322_v24, %v588_v31 }
 0xad1   :  { %592 = vrot.lane.b32.xlu0 %v590_v32, %s1484_s2 }
 0xb43   :  { %v593_v33 = vpop.permute.xlu0 %592 }
 0xb44   :  { %595 = vst.msk [vmem:[#allocation9 + $0x4] sm:$0x1] %vm270_vm2, %v593_v33  ;;  %1191 = vmatmul.mubr.msk.f32.vlgmr.msra.gmra.mrb[4].mxu1 %vm78_vm1, %v593_v33 }
 0xb45   :  { %1270 = vmatpush3.bf16.msra.mxu1 %v1576_v12  ;;  %1212 = vmatprep.mubr.msk.f32.mxu1 %vm1481_vm0, %v1482_v1 }
 0xb46   :  { %1271 = vmatprep.subr.bf16.mxu1 %v1480_v0 }
 0xb49   :  { %1273 = vmatpush3.bf16.msra.mxu1 %v1580_v13 }
 0xc17   :  { %v670_v36 = vpop.f32.mrb[4].mxu1 }
 0xc18   :  { %v674_v37 = vadd.f32 %v670_v36, %v601_v34  ;;  %v1192_v38 = vpop.f32.mrb[5].mxu1 }
 0xc1a   :  { %1325 = vtanh.f32 %v674_v37  ;;  %v1075_v40 = vmul.f32 -1.442695, %v674_v37 }
 0xc1c   :  { %1327 = vpow2.f32 %v1075_v40 }
 0xc24   :  { %v1326_v39 = vpop.eup %1325 }
 0xc25   :  { %684 = vrot.lane.b32.xlu1 %v1326_v39, %s1483_s16 }
 0xc26   :  { %v1328_v41 = vpop.eup %1327 }
 0xc27   :  { %v678_v42 = vadd.f32 1.0, %v1328_v41 }
 0xc29   :  { %1329 = vrcp.f32 %v678_v42 }
 0xc33   :  { %v1330_v43 = vpop.eup %1329 }
 0xc34   :  { %v682_v46 = vmul.f32 %v1330_v43, %v1660_v29 }
 0xc97   :  { %v685_v44 = vpop.permute.xlu1 %684 }
 0xc98   :  { %v687_v45 = vmul.f32 %v1330_v43, %v685_v44 }
 0xc9a   :  { %689 = vrot.lane.b32.xlu0 %v687_v45, %s1483_s16 }
 0xd0c   :  { %v690_v47 = vpop.permute.xlu0 %689 }
 0xd0d   :  { %v1675_v48 = vadd.f32 %v690_v47, %v682_v46 }
 0xd0f   :  { %1331 = vtanh.f32 %v1675_v48 }
 0xd19   :  { %v1332_v49 = vpop.eup %1331 }
 0xd1a   :  { %695 = vrot.lane.b32.xlu1 %v1332_v49, %s1483_s16 }
 0xd8c   :  { %v696_v50 = vpop.permute.xlu1 %695 }
 0xd8d   :  { %v698_v51 = vmul.f32 %v1330_v43, %v696_v50 }
 0xd8f   :  { %700 = vrot.lane.b32.xlu0 %v698_v51, %s1484_s2 }
 0xe01   :  { %v701_v52 = vpop.permute.xlu0 %700 }
 0xe02   :  { %703 = vst.msk [vmem:[#allocation9 + $0x3] sm:$0x1] %vm270_vm2, %v701_v52  ;;  %1202 = vmatmul.mubr.msk.f32.vlgmr.msra.gmra.mrb[6].mxu0 %vm78_vm1, %v701_v52 }
 0xe03   :  { %1276 = vmatpush3.bf16.msra.mxu0 %v1576_v12  ;;  %1223 = vmatprep.mubr.msk.f32.mxu0 %vm1481_vm0, %v1482_v1 }
 0xe04   :  { %1277 = vmatprep.subr.bf16.mxu0 %v1480_v0 }
 0xe07   :  { %1279 = vmatpush3.bf16.msra.mxu0 %v1580_v13 }
 0xed5   :  { %v778_v55 = vpop.f32.mrb[6].mxu0 }
 0xed6   :  { %v782_v56 = vadd.f32 %v778_v55, %v709_v54  ;;  %v1203_v57 = vpop.f32.mrb[7].mxu0 }
 0xed8   :  { %1333 = vtanh.f32 %v782_v56  ;;  %v1077_v59 = vmul.f32 -1.442695, %v782_v56 }
 0xeda   :  { %1335 = vpow2.f32 %v1077_v59 }
 0xee2   :  { %v1334_v58 = vpop.eup %1333 }
 0xee3   :  { %792 = vrot.lane.b32.xlu1 %v1334_v58, %s1483_s16 }
 0xee4   :  { %v1336_v60 = vpop.eup %1335 }
 0xee5   :  { %v786_v61 = vadd.f32 1.0, %v1336_v60 }
 0xee7   :  { %1337 = vrcp.f32 %v786_v61 }
 0xef1   :  { %v1338_v12 = vpop.eup %1337 }
 0xef2   :  { %v790_v0 = vmul.f32 %v1338_v12, %v1675_v48 }
 0xf55   :  { %v793_v62 = vpop.permute.xlu1 %792 }
 0xf56   :  { %v795_v1 = vmul.f32 %v1338_v12, %v793_v62 }
 0xf58   :  { %797 = vrot.lane.b32.xlu0 %v795_v1, %s1483_s16 }
 0xfca   :  { %v798_v13 = vpop.permute.xlu0 %797 }
 0xfcb   :  { %v1690_v63 = vadd.f32 %v798_v13, %v790_v0 }
 0xfcd   :  { %1339 = vtanh.f32 %v1690_v63 }
 0xfd7   :  { %v1340_v2 = vpop.eup %1339 }
 0xfd8   :  { %803 = vrot.lane.b32.xlu1 %v1340_v2, %s1483_s16 }
0x104a   :  { %v804_v3 = vpop.permute.xlu1 %803 }
0x104b   :  { %v806_v4 = vmul.f32 %v1338_v12, %v804_v3 }
0x104d   :  { %808 = vrot.lane.b32.xlu0 %v806_v4, %s1484_s2 }
0x10bf   :  { %v809_v5 = vpop.permute.xlu0 %808 }
0x10c0   :  { %811 = vst.msk [vmem:[#allocation9 + $0x2] sm:$0x1] %vm270_vm2, %v809_v5  ;;  %1213 = vmatmul.mubr.msk.f32.vlgmr.msra.gmra.mrb[6].mxu1 %vm78_vm1, %v809_v5 }
0x1193   :  { %v886_v7 = vpop.f32.mrb[6].mxu1 }
0x1194   :  { %v890_v8 = vadd.f32 %v886_v7, %v817_v6  ;;  %v1214_v10 = vpop.f32.mrb[7].mxu1 }
0x1196   :  { %1341 = vtanh.f32 %v890_v8  ;;  %v1079_v14 = vmul.f32 -1.442695, %v890_v8 }
0x1198   :  { %1343 = vpow2.f32 %v1079_v14 }
0x11a0   :  { %v1342_v11 = vpop.eup %1341 }
0x11a1   :  { %900 = vrot.lane.b32.xlu1 %v1342_v11, %s1483_s16 }
0x11a2   :  { %v1344_v15 = vpop.eup %1343 }
0x11a3   :  { %v894_v16 = vadd.f32 1.0, %v1344_v15 }
0x11a5   :  { %1345 = vrcp.f32 %v894_v16 }
0x11af   :  { %v1346_v17 = vpop.eup %1345 }
0x11b0   :  { %v898_v20 = vmul.f32 %v1346_v17, %v1690_v63 }
0x1213   :  { %v901_v18 = vpop.permute.xlu1 %900 }
0x1214   :  { %v903_v19 = vmul.f32 %v1346_v17, %v901_v18 }
0x1216   :  { %905 = vrot.lane.b32.xlu0 %v903_v19, %s1483_s16 }
0x1288   :  { %v906_v21 = vpop.permute.xlu0 %905 }
0x1289   :  { %v908_v22 = vadd.f32 %v906_v21, %v898_v20 }
0x128b   :  { %1347 = vtanh.f32 %v908_v22 }
0x1295   :  { %v1348_v23 = vpop.eup %1347 }
0x1296   :  { %911 = vrot.lane.b32.xlu1 %v1348_v23, %s1483_s16 }
0x1308   :  { %v912_v24 = vpop.permute.xlu1 %911 }
0x1309   :  { %v914_v25 = vmul.f32 %v1346_v17, %v912_v24 }
0x130b   :  { %916 = vrot.lane.b32.xlu0 %v914_v25, %s1484_s2 }
0x137d   :  { %v917_v26 = vpop.permute.xlu0 %916 }
0x137e   :  { %919 = vst.msk [vmem:[#allocation9 + $0x1] sm:$0x1] %vm270_vm2, %v917_v26  ;;  %1224 = vmatmul.mubr.msk.f32.vlgmr.msra.gmra.mrb[8].mxu0 %vm78_vm1, %v917_v26 }
0x1451   :  { %v994_v28 = vpop.f32.mrb[8].mxu0 }
0x1452   :  { %v998_v30 = vadd.f32 %v994_v28, %v925_v27  ;;  %v1225_v31 = vpop.f32.mrb[9].mxu0 }
0x1454   :  { %1349 = vtanh.f32 %v998_v30  ;;  %v1081_v33 = vmul.f32 -1.442695, %v998_v30 }
0x1456   :  { %1351 = vpow2.f32 %v1081_v33 }
0x145e   :  { %v1350_v32 = vpop.eup %1349 }
0x145f   :  { %1008 = vrot.lane.b32.xlu1 %v1350_v32, %s1483_s16 }
0x1460   :  { %v1352_v34 = vpop.eup %1351 }
0x1461   :  { %v1002_v36 = vadd.f32 1.0, %v1352_v34 }
0x1463   :  { %1353 = vrcp.f32 %v1002_v36 }
0x146d   :  { %v1354_v37 = vpop.eup %1353 }
0x146e   :  { %v1006_v40 = vmul.f32 %v1354_v37, %v908_v22 }
0x14d1   :  { %v1009_v38 = vpop.permute.xlu1 %1008 }
0x14d2   :  { %v1011_v39 = vmul.f32 %v1354_v37, %v1009_v38 }
0x14d4   :  { %1013 = vrot.lane.b32.xlu0 %v1011_v39, %s1483_s16 }
0x14d8   :  { %273 = vrot.lane.b32.xlu0 %v1612_v35, %s1485_s5 }
0x14dc   :  { %489 = vrot.lane.b32.xlu0 %v1644_v9, %s1485_s5 }
0x14e0   :  { %705 = vrot.lane.b32.xlu0 %v1675_v48, %s1485_s5 }
0x14e4   :  { %921 = vrot.lane.b32.xlu0 %v908_v22, %s1485_s5 }
0x1546   :  { %v1014_v41 = vpop.permute.xlu0 %1013 }
0x1547   :  { %v1016_v42 = vadd.f32 %v1014_v41, %v1006_v40 }
0x1549   :  { %1355 = vtanh.f32 %v1016_v42  ;;  %1029 = vrot.lane.b32.xlu0 %v1016_v42, %s1485_s5 }
0x154a   :  { %v274_v43 = vpop.permute.xlu0 %273 }
0x154b   :  { %276 = vst.msk [vmem:[#allocation10 + $0x7] sm:$0x1] %vm270_vm2, %v274_v43 }
0x154e   :  { %v490_v44 = vpop.permute.xlu0 %489 }
0x154f   :  { %492 = vst.msk [vmem:[#allocation10 + $0x5] sm:$0x1] %vm270_vm2, %v490_v44 }
0x1552   :  { %v706_v45 = vpop.permute.xlu0 %705 }
0x1553   :  { %v1356_v46 = vpop.eup %1355  ;;  %708 = vst.msk [vmem:[#allocation10 + $0x3] sm:$0x1] %vm270_vm2, %v706_v45 }
0x1554   :  { %1019 = vrot.lane.b32.xlu1 %v1356_v46, %s1483_s16 }
0x1556   :  { %v922_v35 = vpop.permute.xlu0 %921 }
0x1557   :  { %924 = vst.msk [vmem:[#allocation10 + $0x1] sm:$0x1] %vm270_vm2, %v922_v35 }
0x1558   :  { %381 = vrot.lane.b32.xlu1 %v1628_v53, %s1485_s5 }
0x155c   :  { %597 = vrot.lane.b32.xlu1 %v1660_v29, %s1485_s5 }
0x1560   :  { %813 = vrot.lane.b32.xlu1 %v1690_v63, %s1485_s5 }
0x15bb   :  { %v1030_v9 = vpop.permute.xlu0 %1029 }
0x15bc   :  { %1032 = vst.msk [vmem:[#allocation10] sm:$0x1] %vm270_vm2, %v1030_v9 }
0x15c6   :  { %v1020_v47 = vpop.permute.xlu1 %1019 }
0x15c7   :  { %v1022_v48 = vmul.f32 %v1354_v37, %v1020_v47 }
0x15c9   :  { %1024 = vrot.lane.b32.xlu1 %v1022_v48, %s1484_s2 }
0x15ca   :  { %v382_v49 = vpop.permute.xlu1 %381 }
0x15cb   :  { %384 = vst.msk [vmem:[#allocation10 + $0x6] sm:$0x1] %vm270_vm2, %v382_v49 }
0x15ce   :  { %v598_v50 = vpop.permute.xlu1 %597 }
0x15cf   :  { %600 = vst.msk [vmem:[#allocation10 + $0x4] sm:$0x1] %vm270_vm2, %v598_v50 }
0x15d2   :  { %v814_v53 = vpop.permute.xlu1 %813 }
0x15d3   :  { %816 = vst.msk [vmem:[#allocation10 + $0x2] sm:$0x1] %vm270_vm2, %v814_v53 }
0x15d4   :  { %1434 = shalt.err (!%p1431_p0)
}
0x15d5   :  { %s1435_s24 = scalar_lea.hbm %s1754_s7, 128 }
0x15d6   :  { %p1436_p1 = scmp.ne.s32.totalorder %s1754_s7, %s1435_s24  ;;  %p1439_p2 = scmp.lt.u32.totalorder %s1435_s24, %s1754_s7 }
0x15d8   :  { %p1441_p3 = pnand %p1439_p2, %p1436_p1 }
0x15da   :  { %1444 = shalt.err (!%p1441_p3)
}
0x15db   :  { %1052 = dma.vmem_to_hbm [thread:$0]  %s1050_s20, 128, %s1754_s7, [#allocation11]  }
0x15dc   :  { %s1487_s30 = smov [#allocation9]  }
0x15dd   :  { %s1039_s8 = sshll.u32 %s1487_s30, 4  ;;  %s1040_s8 = int_to_ptr.vmem [resolvable:$true] %s1039_s8 }
0x15de   :  { %s1445_s9 = scalar_lea.vmem %s1040_s8, 128  ;;  %p1450_p5 = scmp.lt.s32.totalorder %s1040_s8, %s1040_s8 }
0x15df   :  { %p1446_p4 = scmp.ne.s32.totalorder %s1040_s8, %s1445_s9  ;;  %p1451_p6 = scmp.lt.s32.totalorder %s1445_s9, %s1445_s9 }
0x15e1   :  { %p1452_p7 = por %p1451_p6, %p1450_p5 }
0x15e3   :  { %p1453_p8 = pnand %p1452_p7, %p1446_p4 }
0x163b   :  { %v1025_v29 = vpop.permute.xlu1 %1024 }
0x163c   :  { %1027 = vst.msk [vmem:[#allocation9] sm:$0x1] %vm270_vm2, %v1025_v29 }
0x163d   :  { %1456 = shalt.err (!%p1453_p8)
}
0x163e   :  { %s1457_s14 = scalar_lea.hbm %s1753_s6, 128 }
0x163f   :  { %p1458_p9 = scmp.ne.s32.totalorder %s1753_s6, %s1457_s14  ;;  %p1461_p10 = scmp.lt.u32.totalorder %s1457_s14, %s1753_s6 }
0x1641   :  { %p1463_p11 = pnand %p1461_p10, %p1458_p9 }
0x1643   :  { %1466 = shalt.err (!%p1463_p11)
}
0x1644   :  { %1042 = dma.vmem_to_hbm [thread:$0]  %s1040_s8, 128, %s1753_s6, [#allocation5]  }
0x1645   :  { %1471 = dma.done.wait [#allocation5], 128  }
0x1646   :  { %1472 = vsyncadd [#allocation5], 4294967168 }
0x1647   :  { %1473 = dma.done.wait [#allocation11], 128  }
0x1648   :  { %1474 = vsyncadd [#allocation11], 4294967168 }
0x1649   :  { %1059 = vsyncpa [#allocation4], 1 }
0x164a   :  { %1060 = vsyncpa [#allocation7], 1 }
0x164b   :  { %1061 = vsyncpa [#allocation5], 1 }
0x164c   :  { %1062 = vsyncpa [#allocation11], 1 }

</bundles_post_ra>
